<compile_context>
chip_gen: v6e
topology: v6e:2x2x1
jax: 0.10.0
libtpu: 0.0.40
codegen_flags: <defaults>
</compile_context>

<pallas_src>
import functools

import jax
import jax.numpy as jnp
import numpy as np
from jax.experimental import pallas as pl
from jax.experimental.pallas import tpu as pltpu

# ------------------------- hyper-parameters (from __init__ defaults) ---------
NUM_TEACHERS = 2
ALPHA = 1.0 / 3.0
BETA = 1.0 / 3.0
TEMPERATURE = 4.0          # use_temp_scaling=False path
EPS = 1e-8


def _softmax(z):
    m = jnp.max(z, axis=-1, keepdims=True)
    e = jnp.exp(z - m)
    return e / jnp.sum(e, axis=-1, keepdims=True)


def _log_softmax(z):
    m = jnp.max(z, axis=-1, keepdims=True)
    s = z - m
    return s - jnp.log(jnp.sum(jnp.exp(s), axis=-1, keepdims=True))


def kd_kernel(tgt_ref, x_ref, w_ref, b_ref, logits_ref, loss_ref, *, num_classes):
    # tgt_ref   : SMEM int32 [B]            scalar-prefetched targets
    # x_ref     : VMEM f32   [TB, C*HW]     lane-dense flattened images (tile)
    # w_ref     : VMEM f32   [C*HW, (1+T)K] fused (student|teachers) head, GAP folded in
    # b_ref     : VMEM f32   [1, (1+T)K]    fused head biases
    # logits_ref: VMEM f32   [TB, K]        student logits (output tile)
    # loss_ref  : VMEM f32   [1, 8, 128]    per-tile partial losses (lane0=CE, lane1=KL)
    i = pl.program_id(0)
    tb = x_ref.shape[0]
    k = num_classes
    inv_t = 1.0 / TEMPERATURE

    # ---- one MXU matmul produces student + all teacher logits at once ------
    logits_all = jnp.dot(x_ref[...], w_ref[...],
                         preferred_element_type=jnp.float32) + b_ref[...]
    s_logits = logits_all[:, :k]
    logits_ref[...] = s_logits

    # ---- teacher ensemble soft-voting (matches _get_teacher_logits) --------
    probs_acc = jnp.zeros_like(s_logits)
    for t in range(NUM_TEACHERS):                               # unrolled
        t_logits = logits_all[:, (t + 1) * k:(t + 2) * k]
        probs_acc = probs_acc + _softmax(t_logits * inv_t)
    ens_logits = jnp.log(probs_acc * (1.0 / NUM_TEACHERS) + EPS)

    # ---- CE partial sum: one-hot mask built in-kernel from SMEM targets ----
    log_p_s = _log_softmax(s_logits)
    row = jax.lax.broadcasted_iota(jnp.int32, (tb, 1), 0)
    tgt_col = jnp.zeros((tb, 1), jnp.int32)
    for b in range(tb):                                         # unrolled, VPU selects
        tgt_col = jnp.where(row == b, tgt_ref[i * tb + b], tgt_col)
    col = jax.lax.broadcasted_iota(jnp.int32, (tb, k), 1)
    onehot = (col == tgt_col).astype(jnp.float32)
    ce_sum = jnp.sum(jnp.sum(-onehot * log_p_s, axis=-1, keepdims=True),
                     axis=0, keepdims=True)                     # [1, 1]

    # ---- KD partial sum: KL(softmax(teacher/T) || softmax(student/T)) ------
    # reuse the teacher log-softmax (p_t = exp(log_p_t)) — no log(softmax(...))
    log_p_t = _log_softmax(ens_logits * inv_t)
    p_t = jnp.exp(log_p_t)
    log_q = _log_softmax(s_logits * inv_t)
    kl_sum = jnp.sum(jnp.sum(p_t * (log_p_t - log_q), axis=-1, keepdims=True),
                     axis=0, keepdims=True)                     # [1, 1]

    # ---- single lane-dense loss block: lane 0 = CE sum, lane 1 = KL sum ----
    lane = jax.lax.broadcasted_iota(jnp.int32, (8, 128), 1)
    loss_ref[0] = (jnp.where(lane == 0, ce_sum, 0.0)
                   + jnp.where(lane == 1, kl_sum, 0.0))


def _pick_batch_tile(batch):
    # Largest convenient sublane-aligned batch tile that evenly divides B;
    # otherwise a single full-array tile (block == full dim is always legal).
    for cand in (32, 16, 8):
        if batch % cand == 0:
            return cand
    return batch


@jax.jit
def kd_forward(x, targets, ws, bs, wt, bt):
    """x: NCHW float array, targets: int labels. Returns dict like forward()."""
    B, C, H, W = x.shape
    K = ws.shape[1]
    HW = H * W
    CHW = C * HW
    KALL = (1 + NUM_TEACHERS) * K

    # lane-dense 2-D image layout; GAP is folded into the fused head weights:
    #   GAP(x) @ W  ==  x_flat @ repeat(W / HW, HW, axis=0)
    x2 = x.reshape(B, CHW).astype(jnp.float32)
    w_all = jnp.concatenate([ws] + [wt[t] for t in range(NUM_TEACHERS)],
                            axis=-1).astype(jnp.float32)          # [C, KALL]
    b_all = jnp.concatenate([bs] + [bt[t] for t in range(NUM_TEACHERS)],
                            axis=-1).astype(jnp.float32)          # [1, KALL]
    w_big = jnp.repeat(w_all / HW, HW, axis=0)                    # [CHW, KALL]
    tgt = targets.astype(jnp.int32)

    TB = _pick_batch_tile(B)
    num_tiles = B // TB

    grid_spec = pltpu.PrefetchScalarGridSpec(
        num_scalar_prefetch=1,                  # targets -> SMEM
        grid=(num_tiles,),
        in_specs=[
            pl.BlockSpec((TB, CHW), lambda i, t: (i, 0)),
            pl.BlockSpec((CHW, KALL), lambda i, t: (0, 0)),
            pl.BlockSpec((1, KALL), lambda i, t: (0, 0)),
        ],
        out_specs=(
            pl.BlockSpec((TB, K), lambda i, t: (i, 0)),
            pl.BlockSpec((1, 8, 128), lambda i, t: (i, 0, 0)),
        ),
    )

    cost = pl.CostEstimate(
        flops=2 * B * CHW * KALL,
        transcendentals=8 * B * KALL,
        bytes_accessed=4 * (B * CHW + CHW * KALL + KALL + B
                            + B * K + num_tiles * 8 * 128),
    )

    s_logits, loss_parts = pl.pallas_call(
        functools.partial(kd_kernel, num_classes=K),
        grid_spec=grid_spec,
        out_shape=(
            jax.ShapeDtypeStruct((B, K), jnp.float32),            # student_logits
            jax.ShapeDtypeStruct((num_tiles, 8, 128), jnp.float32),  # partial losses
        ),
        compiler_params=pltpu.CompilerParams(
            dimension_semantics=("parallel",),
            vmem_limit_bytes=32 * 1024 * 1024,
        ),
        cost_estimate=cost,
    )(tgt, x2, w_big, b_all)

    partials = loss_parts[:, 0, :]                                # (num_tiles, 128)
    ce = jnp.sum(partials[:, 0]) / B                              # batch mean CE
    kd = jnp.sum(partials[:, 1]) * (TEMPERATURE ** 2) / B         # batchmean KL * T^2
    total = ALPHA * ce + BETA * kd

    return {
        "student_logits": s_logits,
        "aux_logits": None,
        "ce_loss": ce,
        "kd_loss": kd,
        "feature_loss": jnp.float32(0.0),   # use_feature_distillation=False
        "total_loss": total,
    }


def _reference(x, targets, ws, bs, wt, bt):
    """Pure-JAX reference mirroring the PyTorch math (for verification)."""
    B, C, H, W = x.shape
    K = ws.shape[1]
    feats = x.reshape(B, C, H * W).mean(-1)
    s_logits = feats @ ws + bs
    probs = jnp.stack([jax.nn.softmax((feats @ wt[t] + bt[t]) / TEMPERATURE, -1)
                       for t in range(NUM_TEACHERS)], 0).mean(0)
    t_logits = jnp.log(probs + EPS)
    onehot = jax.nn.one_hot(targets, K)
    ce = -(onehot * jax.nn.log_softmax(s_logits, -1)).sum(-1).mean()
    p = jax.nn.softmax(t_logits / TEMPERATURE, -1)
    lq = jax.nn.log_softmax(s_logits / TEMPERATURE, -1)
    kd = (p * (jnp.log(p) - lq)).sum() / B * TEMPERATURE ** 2
    return s_logits, ce, kd, ALPHA * ce + BETA * kd


if __name__ == "__main__":
    B, C, H, W = 4, 3, 16, 16
    K = 10  # num_classes

    key = jax.random.PRNGKey(0)
    kx, kt, kws, kbs, kwt, kbt = jax.random.split(key, 6)

    x = jax.random.normal(kx, (B, C, H, W), dtype=jnp.float32)
    targets = jax.random.randint(kt, (B,), 0, K)

    # deterministic synthetic parameters (student + teacher linear heads)
    ws = jax.random.normal(kws, (C, K), dtype=jnp.float32) * 0.5
    bs = jax.random.normal(kbs, (1, K), dtype=jnp.float32) * 0.1
    wt = jax.random.normal(kwt, (NUM_TEACHERS, C, K), dtype=jnp.float32) * 0.5
    bt = jax.random.normal(kbt, (NUM_TEACHERS, 1, K), dtype=jnp.float32) * 0.1

    out = kd_forward(x, targets, ws, bs, wt, bt)
    jax.block_until_ready(out)

    # sanity-check against pure-JAX reference
    ref_logits, ref_ce, ref_kd, ref_tot = _reference(x, targets, ws, bs, wt, bt)
    np.testing.assert_allclose(np.asarray(out["student_logits"]),
                               np.asarray(ref_logits), rtol=1e-3, atol=1e-4)
    np.testing.assert_allclose(float(out["ce_loss"]), float(ref_ce),
                               rtol=1e-3, atol=1e-4)
    np.testing.assert_allclose(float(out["kd_loss"]), float(ref_kd),
                               rtol=1e-3, atol=1e-4)
    np.testing.assert_allclose(float(out["total_loss"]), float(ref_tot),
                               rtol=1e-3, atol=1e-4)

    print("KERNEL_OK")
</pallas_src>

<mosaic_0001>
module attributes {stable_mosaic.version = 11 : i64} {
  func.func @kd_kernel(%arg0: i32, %arg1: memref<4xi32, #tpu.memory_space<smem>>, %arg2: memref<4x768xf32, #tpu.memory_space<vmem>>, %arg3: memref<768x30xf32, #tpu.memory_space<vmem>>, %arg4: memref<1x30xf32, #tpu.memory_space<vmem>>, %arg5: memref<4x10xf32, #tpu.memory_space<vmem>>, %arg6: memref<1x8x128xf32, #tpu.memory_space<vmem>>) attributes {dimension_semantics = [#tpu.dimension_semantics<parallel>], iteration_bounds = array<i64: 1>, scalar_prefetch = 1 : i64, scratch_operands = 0 : i64, tpu.core_type = #tpu.core_type<tc>, window_params = [{transform_indices = @transform_0, window_bounds = array<i64: 4, 768>}, {pipeline_mode = #tpu.pipeline_mode<synchronous>, transform_indices = @transform_1, window_bounds = array<i64: 768, 30>}, {pipeline_mode = #tpu.pipeline_mode<synchronous>, transform_indices = @transform_2, window_bounds = array<i64: 1, 30>}, {transform_indices = @transform_3, window_bounds = array<i64: 4, 10>}, {transform_indices = @transform_4, window_bounds = array<i64: 1, 8, 128>}]} {
    %c0 = arith.constant 0 : index
    %c0_0 = arith.constant 0 : index
    %0 = vector.load %arg2[%c0, %c0_0] : memref<4x768xf32, #tpu.memory_space<vmem>>, vector<4x768xf32>
    %c0_1 = arith.constant 0 : index
    %c0_2 = arith.constant 0 : index
    %1 = vector.load %arg3[%c0_1, %c0_2] : memref<768x30xf32, #tpu.memory_space<vmem>>, vector<768x30xf32>
    %cst = arith.constant dense<0.000000e+00> : vector<4x30xf32>
    %2 = tpu.matmul %0, %1, %cst {dimension_numbers = #tpu.dot_dimension_numbers<[1], [0], [0], [1], [0, 0, 1, 1], [], []>} : vector<4x768xf32>, vector<768x30xf32>, vector<4x30xf32> -> vector<4x30xf32>
    %c0_3 = arith.constant 0 : index
    %c0_4 = arith.constant 0 : index
    %3 = vector.load %arg4[%c0_3, %c0_4] : memref<1x30xf32, #tpu.memory_space<vmem>>, vector<1x30xf32>
    %4 = vector.broadcast %3 : vector<1x30xf32> to vector<4x30xf32>
    %5 = arith.addf %2, %4 : vector<4x30xf32>
    %6 = vector.extract_strided_slice %5 {offsets = [0, 0], sizes = [4, 10], strides = [1, 1]} : vector<4x30xf32> to vector<4x10xf32>
    %c0_5 = arith.constant 0 : index
    %c0_6 = arith.constant 0 : index
    %7 = vector.load %arg5[%c0_5, %c0_6] : memref<4x10xf32, #tpu.memory_space<vmem>>, vector<4x10xf32>
    tpu.vector_store %arg5[%c0_5, %c0_6], %6 {strides = array<i32>} : memref<4x10xf32, #tpu.memory_space<vmem>>, vector<4x10xf32>,
    %cst_7 = arith.constant 0.000000e+00 : f32
    %8 = vector.broadcast %cst_7 : f32 to vector<4x10xf32>
    %9 = vector.extract_strided_slice %5 {offsets = [0, 10], sizes = [4, 10], strides = [1, 1]} : vector<4x30xf32> to vector<4x10xf32>
    %cst_8 = arith.constant 2.500000e-01 : f32
    %10 = vector.broadcast %cst_8 : f32 to vector<4x10xf32>
    %11 = arith.mulf %9, %10 : vector<4x10xf32>
    %cst_9 = arith.constant dense<0xFF800000> : vector<4xf32>
    %12 = vector.multi_reduction <maximumf>, %11, %cst_9 [1] : vector<4x10xf32> to vector<4xf32>
    %13 = vector.shape_cast %12 : vector<4xf32> to vector<4x1xf32>
    %14 = vector.broadcast %13 : vector<4x1xf32> to vector<4x10xf32>
    %15 = arith.subf %11, %14 : vector<4x10xf32>
    %16 = math.exp %15 : vector<4x10xf32>
    %cst_10 = arith.constant dense<0.000000e+00> : vector<4xf32>
    %17 = vector.multi_reduction <add>, %16, %cst_10 [1] : vector<4x10xf32> to vector<4xf32>
    %18 = vector.shape_cast %17 : vector<4xf32> to vector<4x1xf32>
    %19 = vector.broadcast %18 : vector<4x1xf32> to vector<4x10xf32>
    %20 = arith.divf %16, %19 : vector<4x10xf32>
    %21 = arith.addf %8, %20 : vector<4x10xf32>
    %22 = vector.extract_strided_slice %5 {offsets = [0, 20], sizes = [4, 10], strides = [1, 1]} : vector<4x30xf32> to vector<4x10xf32>
    %cst_11 = arith.constant 2.500000e-01 : f32
    %23 = vector.broadcast %cst_11 : f32 to vector<4x10xf32>
    %24 = arith.mulf %22, %23 : vector<4x10xf32>
    %cst_12 = arith.constant dense<0xFF800000> : vector<4xf32>
    %25 = vector.multi_reduction <maximumf>, %24, %cst_12 [1] : vector<4x10xf32> to vector<4xf32>
    %26 = vector.shape_cast %25 : vector<4xf32> to vector<4x1xf32>
    %27 = vector.broadcast %26 : vector<4x1xf32> to vector<4x10xf32>
    %28 = arith.subf %24, %27 : vector<4x10xf32>
    %29 = math.exp %28 : vector<4x10xf32>
    %cst_13 = arith.constant dense<0.000000e+00> : vector<4xf32>
    %30 = vector.multi_reduction <add>, %29, %cst_13 [1] : vector<4x10xf32> to vector<4xf32>
    %31 = vector.shape_cast %30 : vector<4xf32> to vector<4x1xf32>
    %32 = vector.broadcast %31 : vector<4x1xf32> to vector<4x10xf32>
    %33 = arith.divf %29, %32 : vector<4x10xf32>
    %34 = arith.addf %21, %33 : vector<4x10xf32>
    %cst_14 = arith.constant 5.000000e-01 : f32
    %35 = vector.broadcast %cst_14 : f32 to vector<4x10xf32>
    %36 = arith.mulf %34, %35 : vector<4x10xf32>
    %cst_15 = arith.constant 9.99999993E-9 : f32
    %37 = vector.broadcast %cst_15 : f32 to vector<4x10xf32>
    %38 = arith.addf %36, %37 : vector<4x10xf32>
    %39 = math.log %38 : vector<4x10xf32>
    %cst_16 = arith.constant dense<0xFF800000> : vector<4xf32>
    %40 = vector.multi_reduction <maximumf>, %6, %cst_16 [1] : vector<4x10xf32> to vector<4xf32>
    %41 = vector.shape_cast %40 : vector<4xf32> to vector<4x1xf32>
    %42 = vector.broadcast %41 : vector<4x1xf32> to vector<4x10xf32>
    %43 = arith.subf %6, %42 : vector<4x10xf32>
    %44 = math.exp %43 : vector<4x10xf32>
    %cst_17 = arith.constant dense<0.000000e+00> : vector<4xf32>
    %45 = vector.multi_reduction <add>, %44, %cst_17 [1] : vector<4x10xf32> to vector<4xf32>
    %46 = vector.shape_cast %45 : vector<4xf32> to vector<4x1xf32>
    %47 = math.log %46 : vector<4x1xf32>
    %48 = vector.broadcast %47 : vector<4x1xf32> to vector<4x10xf32>
    %49 = arith.subf %43, %48 : vector<4x10xf32>
    %50 = tpu.iota {dimensions = array<i32: 0>} : vector<4x1xi32>
    %c0_i32 = arith.constant 0 : i32
    %51 = vector.broadcast %c0_i32 : i32 to vector<4x1xi32>
    %c0_i32_18 = arith.constant 0 : i32
    %52 = vector.broadcast %c0_i32_18 : i32 to vector<4x1xi32>
    %53 = arith.cmpi eq, %50, %52 : vector<4x1xi32>
    %c4_i32 = arith.constant 4 : i32
    %54 = arith.muli %arg0, %c4_i32 : i32
    %c0_i32_19 = arith.constant 0 : i32
    %55 = arith.addi %54, %c0_i32_19 : i32
    %56 = arith.index_cast %55 : i32 to index
    %57 = memref.load %arg1[%56] : memref<4xi32, #tpu.memory_space<smem>>
    %58 = vector.broadcast %57 : i32 to vector<4x1xi32>
    %59 = arith.select %53, %58, %51 : vector<4x1xi1>, vector<4x1xi32>
    %c1_i32 = arith.constant 1 : i32
    %60 = vector.broadcast %c1_i32 : i32 to vector<4x1xi32>
    %61 = arith.cmpi eq, %50, %60 : vector<4x1xi32>
    %c4_i32_20 = arith.constant 4 : i32
    %62 = arith.muli %arg0, %c4_i32_20 : i32
    %c1_i32_21 = arith.constant 1 : i32
    %63 = arith.addi %62, %c1_i32_21 : i32
    %64 = arith.index_cast %63 : i32 to index
    %65 = memref.load %arg1[%64] : memref<4xi32, #tpu.memory_space<smem>>
    %66 = vector.broadcast %65 : i32 to vector<4x1xi32>
    %67 = arith.select %61, %66, %59 : vector<4x1xi1>, vector<4x1xi32>
    %c2_i32 = arith.constant 2 : i32
    %68 = vector.broadcast %c2_i32 : i32 to vector<4x1xi32>
    %69 = arith.cmpi eq, %50, %68 : vector<4x1xi32>
    %c4_i32_22 = arith.constant 4 : i32
    %70 = arith.muli %arg0, %c4_i32_22 : i32
    %c2_i32_23 = arith.constant 2 : i32
    %71 = arith.addi %70, %c2_i32_23 : i32
    %72 = arith.index_cast %71 : i32 to index
    %73 = memref.load %arg1[%72] : memref<4xi32, #tpu.memory_space<smem>>
    %74 = vector.broadcast %73 : i32 to vector<4x1xi32>
    %75 = arith.select %69, %74, %67 : vector<4x1xi1>, vector<4x1xi32>
    %c3_i32 = arith.constant 3 : i32
    %76 = vector.broadcast %c3_i32 : i32 to vector<4x1xi32>
    %77 = arith.cmpi eq, %50, %76 : vector<4x1xi32>
    %c4_i32_24 = arith.constant 4 : i32
    %78 = arith.muli %arg0, %c4_i32_24 : i32
    %c3_i32_25 = arith.constant 3 : i32
    %79 = arith.addi %78, %c3_i32_25 : i32
    %80 = arith.index_cast %79 : i32 to index
    %81 = memref.load %arg1[%80] : memref<4xi32, #tpu.memory_space<smem>>
    %82 = vector.broadcast %81 : i32 to vector<4x1xi32>
    %83 = arith.select %77, %82, %75 : vector<4x1xi1>, vector<4x1xi32>
    %84 = tpu.iota {dimensions = array<i32: 1>} : vector<4x10xi32>
    %85 = vector.broadcast %83 : vector<4x1xi32> to vector<4x10xi32>
    %86 = arith.cmpi eq, %84, %85 : vector<4x10xi32>
    %87 = arith.extui %86 : vector<4x10xi1> to vector<4x10xi32>
    %88 = arith.sitofp %87 : vector<4x10xi32> to vector<4x10xf32>
    %cst_26 = arith.constant 0.000000e+00 : f32
    %89 = vector.broadcast %cst_26 : f32 to vector<4x10xf32>
    %90 = arith.subf %89, %88 : vector<4x10xf32>
    %91 = arith.mulf %90, %49 : vector<4x10xf32>
    %cst_27 = arith.constant dense<0.000000e+00> : vector<4xf32>
    %92 = vector.multi_reduction <add>, %91, %cst_27 [1] : vector<4x10xf32> to vector<4xf32>
    %93 = vector.shape_cast %92 : vector<4xf32> to vector<4x1xf32>
    %cst_28 = arith.constant dense<0.000000e+00> : vector<1xf32>
    %94 = vector.multi_reduction <add>, %93, %cst_28 [0] : vector<4x1xf32> to vector<1xf32>
    %95 = vector.shape_cast %94 : vector<1xf32> to vector<1x1xf32>
    %cst_29 = arith.constant 2.500000e-01 : f32
    %96 = vector.broadcast %cst_29 : f32 to vector<4x10xf32>
    %97 = arith.mulf %39, %96 : vector<4x10xf32>
    %cst_30 = arith.constant dense<0xFF800000> : vector<4xf32>
    %98 = vector.multi_reduction <maximumf>, %97, %cst_30 [1] : vector<4x10xf32> to vector<4xf32>
    %99 = vector.shape_cast %98 : vector<4xf32> to vector<4x1xf32>
    %100 = vector.broadcast %99 : vector<4x1xf32> to vector<4x10xf32>
    %101 = arith.subf %97, %100 : vector<4x10xf32>
    %102 = math.exp %101 : vector<4x10xf32>
    %cst_31 = arith.constant dense<0.000000e+00> : vector<4xf32>
    %103 = vector.multi_reduction <add>, %102, %cst_31 [1] : vector<4x10xf32> to vector<4xf32>
    %104 = vector.shape_cast %103 : vector<4xf32> to vector<4x1xf32>
    %105 = math.log %104 : vector<4x1xf32>
    %106 = vector.broadcast %105 : vector<4x1xf32> to vector<4x10xf32>
    %107 = arith.subf %101, %106 : vector<4x10xf32>
    %108 = math.exp %107 : vector<4x10xf32>
    %cst_32 = arith.constant 2.500000e-01 : f32
    %109 = vector.broadcast %cst_32 : f32 to vector<4x10xf32>
    %110 = arith.mulf %6, %109 : vector<4x10xf32>
    %cst_33 = arith.constant dense<0xFF800000> : vector<4xf32>
    %111 = vector.multi_reduction <maximumf>, %110, %cst_33 [1] : vector<4x10xf32> to vector<4xf32>
    %112 = vector.shape_cast %111 : vector<4xf32> to vector<4x1xf32>
    %113 = vector.broadcast %112 : vector<4x1xf32> to vector<4x10xf32>
    %114 = arith.subf %110, %113 : vector<4x10xf32>
    %115 = math.exp %114 : vector<4x10xf32>
    %cst_34 = arith.constant dense<0.000000e+00> : vector<4xf32>
    %116 = vector.multi_reduction <add>, %115, %cst_34 [1] : vector<4x10xf32> to vector<4xf32>
    %117 = vector.shape_cast %116 : vector<4xf32> to vector<4x1xf32>
    %118 = math.log %117 : vector<4x1xf32>
    %119 = vector.broadcast %118 : vector<4x1xf32> to vector<4x10xf32>
    %120 = arith.subf %114, %119 : vector<4x10xf32>
    %121 = arith.subf %107, %120 : vector<4x10xf32>
    %122 = arith.mulf %108, %121 : vector<4x10xf32>
    %cst_35 = arith.constant dense<0.000000e+00> : vector<4xf32>
    %123 = vector.multi_reduction <add>, %122, %cst_35 [1] : vector<4x10xf32> to vector<4xf32>
    %124 = vector.shape_cast %123 : vector<4xf32> to vector<4x1xf32>
    %cst_36 = arith.constant dense<0.000000e+00> : vector<1xf32>
    %125 = vector.multi_reduction <add>, %124, %cst_36 [0] : vector<4x1xf32> to vector<1xf32>
    %126 = vector.shape_cast %125 : vector<1xf32> to vector<1x1xf32>
    %127 = tpu.iota {dimensions = array<i32: 1>} : vector<8x128xi32>
    %c0_i32_37 = arith.constant 0 : i32
    %128 = vector.broadcast %c0_i32_37 : i32 to vector<8x128xi32>
    %129 = arith.cmpi eq, %127, %128 : vector<8x128xi32>
    %cst_38 = arith.constant 0.000000e+00 : f32
    %130 = vector.shape_cast %95 : vector<1x1xf32> to vector<1x1xf32>
    %131 = vector.broadcast %130 : vector<1x1xf32> to vector<8x128xf32>
    %132 = vector.broadcast %cst_38 : f32 to vector<8x128xf32>
    %133 = arith.select %129, %131, %132 : vector<8x128xi1>, vector<8x128xf32>
    %c1_i32_39 = arith.constant 1 : i32
    %134 = vector.broadcast %c1_i32_39 : i32 to vector<8x128xi32>
    %135 = arith.cmpi eq, %127, %134 : vector<8x128xi32>
    %cst_40 = arith.constant 0.000000e+00 : f32
    %136 = vector.shape_cast %126 : vector<1x1xf32> to vector<1x1xf32>
    %137 = vector.broadcast %136 : vector<1x1xf32> to vector<8x128xf32>
    %138 = vector.broadcast %cst_40 : f32 to vector<8x128xf32>
    %139 = arith.select %135, %137, %138 : vector<8x128xi1>, vector<8x128xf32>
    %140 = arith.addf %133, %139 : vector<8x128xf32>
    %c0_41 = arith.constant 0 : index
    %c0_42 = arith.constant 0 : index
    %c0_43 = arith.constant 0 : index
    %141 = vector.load %arg6[%c0_41, %c0_42, %c0_43] : memref<1x8x128xf32, #tpu.memory_space<vmem>>, vector<1x8x128xf32>
    %142 = vector.shape_cast %141 : vector<1x8x128xf32> to vector<8x128xf32>
    %143 = vector.shape_cast %140 : vector<8x128xf32> to vector<1x8x128xf32>
    tpu.vector_store %arg6[%c0_41, %c0_42, %c0_43], %143 {strides = array<i32>} : memref<1x8x128xf32, #tpu.memory_space<vmem>>, vector<1x8x128xf32>,
    return
  }
  func.func @transform_0(%arg0: i32, %arg1: memref<4xi32, #tpu.memory_space<smem>>) -> (i32, i32) {
    %c0_i32 = arith.constant 0 : i32
    %c0_i32_0 = arith.constant 0 : i32
    return %arg0, %c0_i32 : i32, i32
  }
  func.func @transform_1(%arg0: i32, %arg1: memref<4xi32, #tpu.memory_space<smem>>) -> (i32, i32) {
    %c0_i32 = arith.constant 0 : i32
    %c0_i32_0 = arith.constant 0 : i32
    %c0_i32_1 = arith.constant 0 : i32
    return %c0_i32, %c0_i32_0 : i32, i32
  }
  func.func @transform_2(%arg0: i32, %arg1: memref<4xi32, #tpu.memory_space<smem>>) -> (i32, i32) {
    %c0_i32 = arith.constant 0 : i32
    %c0_i32_0 = arith.constant 0 : i32
    %c0_i32_1 = arith.constant 0 : i32
    return %c0_i32, %c0_i32_0 : i32, i32
  }
  func.func @transform_3(%arg0: i32, %arg1: memref<4xi32, #tpu.memory_space<smem>>) -> (i32, i32) {
    %c0_i32 = arith.constant 0 : i32
    %c0_i32_0 = arith.constant 0 : i32
    return %arg0, %c0_i32 : i32, i32
  }
  func.func @transform_4(%arg0: i32, %arg1: memref<4xi32, #tpu.memory_space<smem>>) -> (i32, i32, i32) {
    %c0_i32 = arith.constant 0 : i32
    %c0_i32_0 = arith.constant 0 : i32
    %c0_i32_1 = arith.constant 0 : i32
    return %arg0, %c0_i32, %c0_i32_0 : i32, i32, i32
  }
}

</mosaic_0001>

<bundles_post_ra>
// kernel: kd_forward.1
= control target key start
LH: loop header
LB: loop body
LE: loop exit
PB: predicated region body
PF: predicated region fallthrough
CT: control target
= control target key end

     0   :  { %s1072_s0 = inlined_call_operand.vmem [shape: s32[4], index: 0, kind: input, shape index: {}]   ;;  %s1073_s1 = inlined_call_operand.vmem [shape: f32[4,768], index: 1, kind: input, shape index: {}]   ;;  %s1074_s2 = inlined_call_operand.vmem [shape: f32[768,30], index: 2, kind: input, shape index: {}]   ;;  %s1075_s3 = inlined_call_operand.vmem [shape: f32[1,30], index: 3, kind: input, shape index: {}]   ;;  %s1076_s4 = inlined_call_operand.hbm [shape: f32[4,10], index: 4, kind: output, shape index: {0}]   ;;  %s1077_s5 = inlined_call_operand.vmem [shape: f32[1,8,128], index: 5, kind: output, shape index: {1}]  }
   0x1   :  { %s11_s20 = sshll.u32 %s1072_s0, 4  ;;  %s12_s20 = int_to_ptr.vmem [resolvable:$true] %s11_s20 }
   0x2   :  { %s664_s21 = scalar_lea.vmem %s12_s20, 16  ;;  %p669_p1 = scmp.lt.s32.totalorder %s12_s20, %s12_s20 }
   0x3   :  { %p665_p0 = scmp.ne.s32.totalorder %s12_s20, %s664_s21  ;;  %p670_p2 = scmp.lt.s32.totalorder %s664_s21, %s664_s21 }
   0x5   :  { %p671_p3 = por %p670_p2, %p669_p1 }
   0x7   :  { %p672_p4 = pnand %p671_p3, %p665_p0 }
   0x9   :  { %675 = shalt.err (!%p672_p4)  }
   0xa   :  { %s700_s22 = smov [#allocation3]  }
   0xb   :  { %14 = dma.vmem_to_smem %s12_s20, 16, %s700_s22, [#allocation2] }
   0xc   :  { %696 = dma.done.wait [#allocation2], 16 }
   0xd   :  { %697 = vsyncadd [#allocation2], 4294967280 }
   0xe   :  { %16 = sfence }
   0xf   :  { %v58_v0 = vld [vmem:[%s1074_s2 + $0xf8] sm:$0xff]  ;;  %v57_v2 = vld [vmem:[%s1074_s2 + $0xf0] sm:$0xff]  ;;  %v56_v6 = vld [vmem:[%s1074_s2 + $0xe8] sm:$0xff] }
  0x10   :  { %v42_v1 = vld [vmem:[%s1074_s2 + $0x78] sm:$0xff]  ;;  %526 = vmatprep.subr.mxu0 %v58_v0  ;;  %v41_v4 = vld [vmem:[%s1074_s2 + $0x70] sm:$0xff]  ;;  %v40_v8 = vld [vmem:[%s1074_s2 + $0x68] sm:$0xff] }
  0x11   :  { %v90_v3 = vld [vmem:[%s1074_s2 + $0x1f8] sm:$0xff]  ;;  %527 = vmatpush3.msra.mxu0 %v42_v1  ;;  %v89_v7 = vld [vmem:[%s1074_s2 + $0x1f0] sm:$0xff]  ;;  %v88_v10 = vld [vmem:[%s1074_s2 + $0x1e8] sm:$0xff] }
  0x12   :  { %v74_v5 = vld [vmem:[%s1074_s2 + $0x178] sm:$0xff]  ;;  %561 = vmatprep.subr.mxu1 %v90_v3  ;;  %528 = vmatprep.subr.mxu0 %v57_v2  ;;  %v73_v9 = vld [vmem:[%s1074_s2 + $0x170] sm:$0xff]  ;;  %v55_v11 = vld [vmem:[%s1074_s2 + $0xe0] sm:$0xff] }
  0x13   :  { %562 = vmatpush3.msra.mxu1 %v74_v5  ;;  %529 = vmatpush3.msra.mxu0 %v41_v4  ;;  %v72_v12 = vld [vmem:[%s1074_s2 + $0x168] sm:$0xff]  ;;  %v39_v13 = vld [vmem:[%s1074_s2 + $0x60] sm:$0xff]  ;;  %v54_v15 = vld [vmem:[%s1074_s2 + $0xd8] sm:$0xff] }
  0x14   :  { %563 = vmatprep.subr.mxu1 %v89_v7  ;;  %530 = vmatprep.subr.mxu0 %v56_v6  ;;  %v87_v14 = vld [vmem:[%s1074_s2 + $0x1e0] sm:$0xff]  ;;  %v38_v17 = vld [vmem:[%s1074_s2 + $0x58] sm:$0xff]  ;;  %v53_v19 = vld [vmem:[%s1074_s2 + $0xd0] sm:$0xff] }
  0x15   :  { %564 = vmatpush3.msra.mxu1 %v73_v9  ;;  %531 = vmatpush3.msra.mxu0 %v40_v8  ;;  %v71_v16 = vld [vmem:[%s1074_s2 + $0x160] sm:$0xff]  ;;  %v86_v18 = vld [vmem:[%s1074_s2 + $0x1d8] sm:$0xff]  ;;  %v37_v21 = vld [vmem:[%s1074_s2 + $0x50] sm:$0xff] }
  0x16   :  { %565 = vmatprep.subr.mxu1 %v88_v10  ;;  %532 = vmatprep.subr.mxu0 %v55_v11  ;;  %v70_v20 = vld [vmem:[%s1074_s2 + $0x158] sm:$0xff]  ;;  %v85_v22 = vld [vmem:[%s1074_s2 + $0x1d0] sm:$0xff]  ;;  %v52_v23 = vld [vmem:[%s1074_s2 + $0xc8] sm:$0xff] }
  0x17   :  { %566 = vmatpush3.msra.mxu1 %v72_v12  ;;  %533 = vmatpush3.msra.mxu0 %v39_v13  ;;  %v69_v24 = vld [vmem:[%s1074_s2 + $0x150] sm:$0xff]  ;;  %v36_v25 = vld [vmem:[%s1074_s2 + $0x48] sm:$0xff]  ;;  %v51_v27 = vld [vmem:[%s1074_s2 + $0xc0] sm:$0xff] }
  0x18   :  { %567 = vmatprep.subr.mxu1 %v87_v14  ;;  %534 = vmatprep.subr.mxu0 %v54_v15  ;;  %v84_v26 = vld [vmem:[%s1074_s2 + $0x1c8] sm:$0xff]  ;;  %v35_v29 = vld [vmem:[%s1074_s2 + $0x40] sm:$0xff]  ;;  %v50_v31 = vld [vmem:[%s1074_s2 + $0xb8] sm:$0xff] }
  0x19   :  { %568 = vmatpush3.msra.mxu1 %v71_v16  ;;  %535 = vmatpush3.msra.mxu0 %v38_v17  ;;  %v68_v28 = vld [vmem:[%s1074_s2 + $0x148] sm:$0xff]  ;;  %v83_v30 = vld [vmem:[%s1074_s2 + $0x1c0] sm:$0xff]  ;;  %v34_v33 = vld [vmem:[%s1074_s2 + $0x38] sm:$0xff] }
  0x1a   :  { %569 = vmatprep.subr.mxu1 %v86_v18  ;;  %536 = vmatprep.subr.mxu0 %v53_v19  ;;  %v67_v32 = vld [vmem:[%s1074_s2 + $0x140] sm:$0xff]  ;;  %v82_v34 = vld [vmem:[%s1074_s2 + $0x1b8] sm:$0xff]  ;;  %v49_v35 = vld [vmem:[%s1074_s2 + $0xb0] sm:$0xff] }
  0x1b   :  { %570 = vmatpush3.msra.mxu1 %v70_v20  ;;  %537 = vmatpush3.msra.mxu0 %v37_v21  ;;  %v66_v36 = vld [vmem:[%s1074_s2 + $0x138] sm:$0xff]  ;;  %v33_v37 = vld [vmem:[%s1074_s2 + $0x30] sm:$0xff]  ;;  %v48_v39 = vld [vmem:[%s1074_s2 + $0xa8] sm:$0xff] }
  0x1c   :  { %571 = vmatprep.subr.mxu1 %v85_v22  ;;  %538 = vmatprep.subr.mxu0 %v52_v23  ;;  %v81_v38 = vld [vmem:[%s1074_s2 + $0x1b0] sm:$0xff]  ;;  %v32_v41 = vld [vmem:[%s1074_s2 + $0x28] sm:$0xff]  ;;  %v47_v43 = vld [vmem:[%s1074_s2 + $0xa0] sm:$0xff] }
  0x1d   :  { %572 = vmatpush3.msra.mxu1 %v69_v24  ;;  %539 = vmatpush3.msra.mxu0 %v36_v25  ;;  %v65_v40 = vld [vmem:[%s1074_s2 + $0x130] sm:$0xff]  ;;  %v80_v42 = vld [vmem:[%s1074_s2 + $0x1a8] sm:$0xff]  ;;  %v31_v45 = vld [vmem:[%s1074_s2 + $0x20] sm:$0xff] }
  0x1e   :  { %573 = vmatprep.subr.mxu1 %v84_v26  ;;  %540 = vmatprep.subr.mxu0 %v51_v27  ;;  %v64_v44 = vld [vmem:[%s1074_s2 + $0x128] sm:$0xff]  ;;  %v79_v46 = vld [vmem:[%s1074_s2 + $0x1a0] sm:$0xff]  ;;  %v46_v47 = vld [vmem:[%s1074_s2 + $0x98] sm:$0xff] }
  0x1f   :  { %574 = vmatpush3.msra.mxu1 %v68_v28  ;;  %541 = vmatpush3.msra.mxu0 %v35_v29  ;;  %v63_v48 = vld [vmem:[%s1074_s2 + $0x120] sm:$0xff]  ;;  %v30_v49 = vld [vmem:[%s1074_s2 + $0x18] sm:$0xff]  ;;  %v45_v51 = vld [vmem:[%s1074_s2 + $0x90] sm:$0xff] }
  0x20   :  { %575 = vmatprep.subr.mxu1 %v83_v30  ;;  %542 = vmatprep.subr.mxu0 %v50_v31  ;;  %v78_v50 = vld [vmem:[%s1074_s2 + $0x198] sm:$0xff]  ;;  %v24_v53 = vld [vmem:[%s1073_s1] sm:$0xff]  ;;  %v29_v54 = vld [vmem:[%s1074_s2 + $0x10] sm:$0xff] }
  0x21   :  { %576 = vmatpush3.msra.mxu1 %v67_v32  ;;  %543 = vmatpush3.msra.mxu0 %v34_v33  ;;  %v62_v52 = vld [vmem:[%s1074_s2 + $0x118] sm:$0xff]  ;;  %v77_v55 = vld [vmem:[%s1074_s2 + $0x190] sm:$0xff]  ;;  %v44_v56 = vld [vmem:[%s1074_s2 + $0x88] sm:$0xff]  ;;  %v133_v60 = vcombine.high %v24_v53, %v24_v53 }
  0x22   :  { %577 = vmatprep.subr.mxu1 %v82_v34  ;;  %544 = vmatprep.subr.mxu0 %v49_v35  ;;  %v61_v57 = vld [vmem:[%s1074_s2 + $0x110] sm:$0xff]  ;;  %v28_v58 = vld [vmem:[%s1074_s2 + $0x8] sm:$0xff]  ;;  %v43_v61 = vld [vmem:[%s1074_s2 + $0x80] sm:$0xff] }
  0x23   :  { %578 = vmatpush3.msra.mxu1 %v66_v36  ;;  %545 = vmatpush3.msra.mxu0 %v33_v37  ;;  %v76_v59 = vld [vmem:[%s1074_s2 + $0x188] sm:$0xff]  ;;  %v27_v63 = vld [vmem:[%s1074_s2] sm:$0xff]  ;;  %v122_v2 = vld [vmem:[%s1074_s2 + $0x2f8] sm:$0xff] }
  0x24   :  { %579 = vmatprep.subr.mxu1 %v81_v38  ;;  %546 = vmatprep.subr.mxu0 %v48_v39  ;;  %v25_v62 = vld [vmem:[%s1073_s1 + $0x8] sm:$0xff]  ;;  %v75_v1 = vld [vmem:[%s1074_s2 + $0x180] sm:$0xff]  ;;  %v106_v5 = vld [vmem:[%s1074_s2 + $0x278] sm:$0xff] }
  0x25   :  { %580 = vmatpush3.msra.mxu1 %v65_v40  ;;  %547 = vmatpush3.msra.mxu0 %v32_v41  ;;  %v60_v0 = vld [vmem:[%s1074_s2 + $0x108] sm:$0xff]  ;;  %v59_v3 = vld [vmem:[%s1074_s2 + $0x100] sm:$0xff]  ;;  %v134_v4 = vcombine.high %v25_v62, %v25_v62  ;;  %v946_v6 = vld [vmem:[%s1073_s1 + $0x10] sm:$0xff] }
  0x26   :  { %581 = vmatprep.subr.mxu1 %v80_v42  ;;  %548 = vmatprep.subr.mxu0 %v47_v43  ;;  %v121_v7 = vld [vmem:[%s1074_s2 + $0x2f0] sm:$0xff]  ;;  %v135_v8 = vcombine.high %v946_v6, %v946_v6 }
  0x27   :  { %582 = vmatpush3.msra.mxu1 %v64_v44  ;;  %549 = vmatpush3.msra.mxu0 %v31_v45 }
  0x28   :  { %583 = vmatprep.subr.mxu1 %v79_v46  ;;  %550 = vmatprep.subr.mxu0 %v46_v47 }
  0x29   :  { %584 = vmatpush3.msra.mxu1 %v63_v48  ;;  %551 = vmatpush3.msra.mxu0 %v30_v49 }
  0x2a   :  { %585 = vmatprep.subr.mxu1 %v78_v50  ;;  %552 = vmatprep.subr.mxu0 %v45_v51 }
  0x2b   :  { %586 = vmatpush3.msra.mxu1 %v62_v52  ;;  %553 = vmatpush3.msra.mxu0 %v29_v54 }
  0x2c   :  { %587 = vmatprep.subr.mxu1 %v77_v55  ;;  %554 = vmatprep.subr.mxu0 %v44_v56 }
  0x2d   :  { %588 = vmatpush3.msra.mxu1 %v61_v57  ;;  %555 = vmatpush3.msra.mxu0 %v28_v58 }
  0x2e   :  { %589 = vmatprep.subr.mxu1 %v76_v59  ;;  %556 = vmatprep.subr.mxu0 %v43_v61 }
  0x2f   :  { %203 = vmatprep.mubr.f32.mxu0 %v133_v60  ;;  %557 = vmatpush3.msra.mxu0 %v27_v63 }
  0x30   :  { %590 = vmatpush3.msra.mxu1 %v60_v0  ;;  %204 = vmatmul.mubr.f32.vlgmr.msra.gmra.mxu0 %v24_v53 }
  0x31   :  { %591 = vmatprep.subr.mxu1 %v75_v1 }
  0x32   :  { %17 = vsyncpa [#allocation5], 0  ;;  %596 = vmatprep.subr.mxu0 %v122_v2  ;;  %592 = vmatpush3.msra.mxu1 %v59_v3  ;;  %v105_v9 = vld [vmem:[%s1074_s2 + $0x270] sm:$0xff]  ;;  %v120_v10 = vld [vmem:[%s1074_s2 + $0x2e8] sm:$0xff]  ;;  %vm349_vm0 = vcmask 76800   ;;  %vm369_vm1 = vcmask 240800  }
  0x33   :  { %273 = vmatprep.mubr.f32.mxu1 %v134_v4  ;;  %597 = vmatpush3.msra.mxu0 %v106_v5  ;;  %v104_v11 = vld [vmem:[%s1074_s2 + $0x268] sm:$0xff]  ;;  %v119_v12 = vld [vmem:[%s1074_s2 + $0x2e0] sm:$0xff]  ;;  %v118_v14 = vld [vmem:[%s1074_s2 + $0x2d8] sm:$0xff]  ;;  %vm352_vm2 = vcmask 158800   ;;  %s703_s12 = smov 10   ;;  %s410_s13 = sld [smem:[#allocation3]] }
  0x34   :  { %274 = vmatmul.mubr.f32.vlgmr.msra.gmra.mxu1 %v25_v62  ;;  %598 = vmatprep.subr.mxu0 %v121_v7  ;;  %v103_v13 = vld [vmem:[%s1074_s2 + $0x260] sm:$0xff]  ;;  %v102_v15 = vld [vmem:[%s1074_s2 + $0x258] sm:$0xff]  ;;  %v117_v16 = vld [vmem:[%s1074_s2 + $0x2d0] sm:$0xff]  ;;  %s522_s14 = sld [smem:[#allocation3 + $0x1]]  ;;  %s705_s17 = smov [#allocation4]  }
  0x35   :  { %599 = vmatpush3.msra.mxu0 %v105_v9  ;;  %343 = vmatprep.mubr.f32.mxu0 %v135_v8  ;;  %v101_v17 = vld [vmem:[%s1074_s2 + $0x250] sm:$0xff]  ;;  %v116_v18 = vld [vmem:[%s1074_s2 + $0x2c8] sm:$0xff]  ;;  %v115_v20 = vld [vmem:[%s1074_s2 + $0x2c0] sm:$0xff]  ;;  %s523_s15 = sld [smem:[#allocation3 + $0x2]]  ;;  %s509_s18 = sshll.u32 %s705_s17, 4  ;;  %s510_s18 = int_to_ptr.vmem [resolvable:$true] %s509_s18 }
  0x36   :  { %600 = vmatprep.subr.mxu0 %v120_v10  ;;  %v100_v19 = vld [vmem:[%s1074_s2 + $0x248] sm:$0xff]  ;;  %v99_v21 = vld [vmem:[%s1074_s2 + $0x240] sm:$0xff]  ;;  %v114_v22 = vld [vmem:[%s1074_s2 + $0x2b8] sm:$0xff]  ;;  %s524_s16 = sld [smem:[#allocation3 + $0x3]]  ;;  %s676_s19 = scalar_lea.vmem %s510_s18, 64 }
  0x37   :  { %601 = vmatpush3.msra.mxu0 %v104_v11  ;;  %v98_v23 = vld [vmem:[%s1074_s2 + $0x238] sm:$0xff]  ;;  %v113_v24 = vld [vmem:[%s1074_s2 + $0x2b0] sm:$0xff]  ;;  %v112_v26 = vld [vmem:[%s1074_s2 + $0x2a8] sm:$0xff]  ;;  %p677_p5 = scmp.ne.s32.totalorder %s510_s18, %s676_s19  ;;  %p681_p6 = scmp.lt.s32.totalorder %s510_s18, %s510_s18 }
  0x38   :  { %602 = vmatprep.subr.mxu0 %v119_v12  ;;  %v97_v25 = vld [vmem:[%s1074_s2 + $0x230] sm:$0xff]  ;;  %v96_v27 = vld [vmem:[%s1074_s2 + $0x228] sm:$0xff]  ;;  %v111_v28 = vld [vmem:[%s1074_s2 + $0x2a0] sm:$0xff]  ;;  %p682_p7 = scmp.lt.s32.totalorder %s676_s19, %s676_s19 }
  0x39   :  { %603 = vmatpush3.msra.mxu0 %v103_v13  ;;  %v95_v29 = vld [vmem:[%s1074_s2 + $0x220] sm:$0xff]  ;;  %v110_v30 = vld [vmem:[%s1074_s2 + $0x298] sm:$0xff]  ;;  %v109_v32 = vld [vmem:[%s1074_s2 + $0x290] sm:$0xff] }
  0x3a   :  { %604 = vmatprep.subr.mxu0 %v118_v14  ;;  %v94_v31 = vld [vmem:[%s1074_s2 + $0x218] sm:$0xff]  ;;  %v93_v33 = vld [vmem:[%s1074_s2 + $0x210] sm:$0xff]  ;;  %v108_v34 = vld [vmem:[%s1074_s2 + $0x288] sm:$0xff]  ;;  %p683_p8 = por %p682_p7, %p681_p6 }
  0x3b   :  { %605 = vmatpush3.msra.mxu0 %v102_v15  ;;  %v92_v35 = vld [vmem:[%s1074_s2 + $0x208] sm:$0xff]  ;;  %v107_v36 = vld [vmem:[%s1074_s2 + $0x280] sm:$0xff] }
  0x3c   :  { %606 = vmatprep.subr.mxu0 %v117_v16  ;;  %v91_v37 = vld [vmem:[%s1074_s2 + $0x200] sm:$0xff]  ;;  %s701_s2 = smov 108   ;;  %p684_p9 = pnand %p683_p8, %p677_p5 }
  0x3d   :  { %607 = vmatpush3.msra.mxu0 %v101_v17  ;;  %v521_v42 = vld [vmem:[%s1075_s3] ss:$0 sm:$0xff]  ;;  %s702_s3 = smov 118  }
  0x3e   :  { %608 = vmatprep.subr.mxu0 %v116_v18 }
  0x3f   :  { %609 = vmatpush3.msra.mxu0 %v100_v19 }
  0x40   :  { %610 = vmatprep.subr.mxu0 %v115_v20 }
  0x41   :  { %611 = vmatpush3.msra.mxu0 %v99_v21 }
  0x42   :  { %612 = vmatprep.subr.mxu0 %v114_v22 }
  0x43   :  { %613 = vmatpush3.msra.mxu0 %v98_v23 }
  0x44   :  { %614 = vmatprep.subr.mxu0 %v113_v24 }
  0x45   :  { %615 = vmatpush3.msra.mxu0 %v97_v25 }
  0x46   :  { %616 = vmatprep.subr.mxu0 %v112_v26 }
  0x47   :  { %617 = vmatpush3.msra.mxu0 %v96_v27 }
  0x48   :  { %618 = vmatprep.subr.mxu0 %v111_v28 }
  0x49   :  { %619 = vmatpush3.msra.mxu0 %v95_v29 }
  0x4a   :  { %620 = vmatprep.subr.mxu0 %v110_v30 }
  0x4b   :  { %621 = vmatpush3.msra.mxu0 %v94_v31 }
  0x4c   :  { %622 = vmatprep.subr.mxu0 %v109_v32 }
  0x4d   :  { %623 = vmatpush3.msra.mxu0 %v93_v33 }
  0x4e   :  { %624 = vmatprep.subr.mxu0 %v108_v34 }
  0x4f   :  { %625 = vmatpush3.msra.mxu0 %v92_v35 }
  0x50   :  { %626 = vmatprep.subr.mxu0 %v107_v36 }
  0x51   :  { %627 = vmatpush3.msra.mxu0 %v91_v37 }
  0x52   :  { %344 = vmatmul.mubr.f32.vlgmr.msra.gmra.mxu0 %v946_v6 }
  0xf0   :  { %v558_v38 = vpop.f32.mrf.mxu0 }
  0xf2   :  { %v559_v39 = vpop.f32.mrf.mxu0 }
  0xf3   :  { %v560_v41 = vadd.f32 %v559_v39, %v558_v38 }
  0xf4   :  { %v593_v40 = vpop.f32.mrf.mxu1 }
  0xf5   :  { %v206_v44 = vadd.f32 %v560_v41, %v521_v42 }
  0xf6   :  { %v594_v43 = vpop.f32.mrf.mxu1 }
  0xf7   :  { %v595_v45 = vadd.f32 %v594_v43, %v593_v40 }
  0xf9   :  { %v276_v48 = vadd.f32 %v595_v45, %v206_v44 }
 0x112   :  { %v628_v46 = vpop.f32.mrf.mxu0 }
 0x114   :  { %v629_v47 = vpop.f32.mrf.mxu0 }
 0x115   :  { %v630_v49 = vadd.f32 %v629_v47, %v628_v46  ;;  %v406_v47 = vlaneseq }
 0x117   :  { %v1044_v50 = vadd.f32 %v630_v49, %v276_v48  ;;  %v407_v48 = vshrl.u32 %v406_v47, 7  ;;  %v411_v49 = vstv %s410_s13 }
 0x119   :  { %v351_v51 = vmul.f32 0.25, %v1044_v50  ;;  %350 = vst.msk [vmem:[#allocation4] sm:$0xf] %vm349_vm0, %v1044_v50  ;;  %v394_v26 = vsel %vm349_vm0, %v1044_v50, -inf  ;;  %vm408_vm3 = vcmp.eq.s32.totalorder %v407_v48, 0  ;;  %vm413_vm4 = vcmp.eq.s32.totalorder %v407_v48, 1 }
 0x11a   :  { %vm418_vm5 = vcmp.eq.s32.totalorder %v407_v48, 2  ;;  %vm423_vm6 = vcmp.eq.s32.totalorder %v407_v48, 3 }
 0x11b   :  { %v370_v52 = vsel %vm369_vm1, %v351_v51, -inf  ;;  %v353_v53 = vsel %vm352_vm2, %v351_v51, -inf  ;;  %v465_v2 = vsel %vm349_vm0, %v351_v51, -inf }
 0x11c   :  { %371 = vmax.xlane.f32.xlu0 %v370_v52 }
 0x120   :  { %354 = vmax.xlane.f32.xlu0 %v353_v53 }
 0x1a5   :  { %v372_v54 = vpop.xlane.xlu0 %371 }
 0x1a6   :  { %v373_v55 = vsub.f32 %v351_v51, %v372_v54  ;;  %v421_v54 = vstv %s523_s15 }
 0x1a8   :  { %v374_v56 = vmul.f32 1.442695, %v373_v55 }
 0x1a9   :  { %v355_v57 = vpop.xlane.xlu0 %354 }
 0x1aa   :  { %640 = vpow2.f32 %v374_v56  ;;  %v356_v58 = vsub.f32 %v351_v51, %v355_v57  ;;  %v426_v56 = vstv %s524_s16  ;;  %v429_v57 = vand.u32 127, %v406_v47 }
 0x1ac   :  { %v357_v59 = vmul.f32 1.442695, %v356_v58 }
 0x1ae   :  { %642 = vpow2.f32 %v357_v59  ;;  %v704_v59 = vmov 0.0  }
 0x1b7   :  { %v641_v60 = vpop.eup %640 }
 0x1b8   :  { %377 = vrot.lane.b32.xlu1 %v641_v60, %s701_s2 }
 0x1bb   :  { %v643_v61 = vpop.eup %642 }
 0x1bc   :  { %360 = vrot.lane.b32.xlu1 %v643_v61, %s702_s3 }
 0x22a   :  { %v378_v62 = vpop.permute.xlu1 %377 }
 0x22b   :  { %v380_v63 = vsel %vm349_vm0, %v378_v62, 0.0 }
 0x22c   :  { %381 = vadd.xlane.f32.xlu0 %v380_v63 }
 0x22e   :  { %v361_v0 = vpop.permute.xlu1 %360 }
 0x22f   :  { %v363_v1 = vsel %vm349_vm0, %v361_v0, 0.0 }
 0x230   :  { %364 = vadd.xlane.f32.xlu1 %v363_v1 }
 0x234   :  { %466 = vmax.xlane.f32.xlu1 %v465_v2 }
 0x2b5   :  { %v382_v3 = vpop.xlane.xlu0 %381 }
 0x2b6   :  { %644 = vrcp.f32 %v382_v3 }
 0x2b9   :  { %v365_v6 = vpop.xlane.xlu1 %364 }
 0x2ba   :  { %646 = vrcp.f32 %v365_v6 }
 0x2bd   :  { %v467_v11 = vpop.xlane.xlu1 %466 }
 0x2be   :  { %v468_v13 = vsub.f32 %v351_v51, %v467_v11  ;;  %v416_v51 = vstv %s522_s14 }
 0x2c0   :  { %v469_v15 = vmul.f32 1.442695, %v468_v13 }
 0x2c3   :  { %v645_v4 = vpop.eup %644 }
 0x2c4   :  { %v384_v5 = vmul.f32 %v645_v4, %v641_v60 }
 0x2c6   :  { %386 = vrot.lane.b32.xlu0 %v384_v5, %s702_s3 }
 0x2c7   :  { %v647_v7 = vpop.eup %646 }
 0x2c8   :  { %v367_v8 = vmul.f32 %v647_v7, %v643_v61 }
 0x338   :  { %v387_v9 = vpop.permute.xlu0 %386 }
 0x339   :  { %v389_v10 = vadd.f32 %v387_v9, %v367_v8 }
 0x33b   :  { %v390_v12 = vmul.f32 0.5, %v389_v10 }
 0x33d   :  { %v391_v14 = vadd.f32 1e-08, %v390_v12 }
 0x33f   :  { %648 = vlog2.f32 %v391_v14 }
 0x340   :  { %650 = vpow2.f32 %v469_v15 }
 0x34c   :  { %v649_v16 = vpop.eup %648 }
 0x34d   :  { %v393_v17 = vmul.f32 0.6931472, %v649_v16  ;;  %v651_v20 = vpop.eup %650 }
 0x34e   :  { %v471_v21 = vsel %vm349_vm0, %v651_v20, 0.0 }
 0x34f   :  { %v446_v18 = vmul.f32 0.25, %v393_v17 }
 0x351   :  { %v447_v19 = vsel %vm352_vm2, %v446_v18, -inf }
 0x352   :  { %448 = vmax.xlane.f32.xlu0 %v447_v19 }
 0x356   :  { %472 = vadd.xlane.f32.xlu0 %v471_v21 }
 0x3db   :  { %v449_v22 = vpop.xlane.xlu0 %448 }
 0x3dc   :  { %v450_v23 = vsub.f32 %v446_v18, %v449_v22 }
 0x3de   :  { %v451_v24 = vmul.f32 1.442695, %v450_v23 }
 0x3df   :  { %v473_v27 = vpop.xlane.xlu0 %472 }
 0x3e0   :  { %652 = vpow2.f32 %v451_v24 }
 0x3e1   :  { %654 = vlog2.f32 %v473_v27 }
 0x3ed   :  { %v653_v25 = vpop.eup %652 }
 0x3ee   :  { %454 = vrot.lane.b32.xlu1 %v653_v25, %s702_s3  ;;  %v655_v30 = vpop.eup %654 }
 0x3ef   :  { %v475_v31 = vmul.f32 0.6931472, %v655_v30 }
 0x3f1   :  { %v476_v32 = vsub.f32 %v468_v13, %v475_v31 }
 0x412   :  { %395 = vmax.xlane.f32.xlu1 %v394_v26 }
 0x460   :  { %v455_v28 = vpop.permute.xlu1 %454 }
 0x461   :  { %v457_v29 = vsel %vm349_vm0, %v455_v28, 0.0 }
 0x462   :  { %458 = vadd.xlane.f32.xlu0 %v457_v29 }
 0x478   :  { %478 = vrot.lane.b32.xlu0 %v476_v32, %s703_s12 }
 0x49b   :  { %v396_v33 = vpop.xlane.xlu1 %395 }
 0x49c   :  { %v397_v34 = vsub.f32 %v1044_v50, %v396_v33  ;;  %v412_v50 = vsel %vm408_vm3, %v411_v49, 0 }
 0x49d   :  { %v417_v53 = vsel %vm413_vm4, %v416_v51, %v412_v50 }
 0x49e   :  { %v398_v35 = vmul.f32 1.442695, %v397_v34  ;;  %v422_v55 = vsel %vm418_vm5, %v421_v54, %v417_v53 }
 0x49f   :  { %v427_v58 = vsel %vm423_vm6, %v426_v56, %v422_v55 }
 0x4a0   :  { %656 = vpow2.f32 %v398_v35  ;;  %vm430_vm7 = vcmp.eq.s32.totalorder %v429_v57, %v427_v58 }
 0x4a1   :  { %v525_v60 = vsel %vm430_vm7, 1.0, %v704_v59 }
 0x4a2   :  { %v433_v63 = vsub.f32 0.0, %v525_v60 }
 0x4ad   :  { %v657_v36 = vpop.eup %656 }
 0x4ae   :  { %v400_v37 = vsel %vm349_vm0, %v657_v36, 0.0 }
 0x4af   :  { %401 = vadd.xlane.f32.xlu0 %v400_v37 }
 0x4eb   :  { %v459_v38 = vpop.xlane.xlu0 %458 }
 0x4ec   :  { %658 = vlog2.f32 %v459_v38 }
 0x4ef   :  { %v479_v43 = vpop.permute.xlu0 %478 }
 0x4f9   :  { %v659_v39 = vpop.eup %658 }
 0x4fa   :  { %v461_v40 = vmul.f32 0.6931472, %v659_v39 }
 0x4fc   :  { %v462_v41 = vsub.f32 %v450_v23, %v461_v40 }
 0x4fe   :  { %v463_v42 = vmul.f32 1.442695, %v462_v41  ;;  %v481_v44 = vsub.f32 %v462_v41, %v479_v43 }
 0x500   :  { %660 = vpow2.f32 %v463_v42 }
 0x50d   :  { %v661_v45 = vpop.eup %660 }
 0x50e   :  { %v482_v46 = vmul.f32 %v661_v45, %v481_v44 }
 0x510   :  { %484 = vrot.lane.b32.xlu1 %v482_v46, %s702_s3 }
 0x538   :  { %v402_v52 = vpop.xlane.xlu0 %401 }
 0x539   :  { %662 = vlog2.f32 %v402_v52 }
 0x546   :  { %v663_v61 = vpop.eup %662 }
 0x547   :  { %v404_v62 = vmul.f32 0.6931472, %v663_v61 }
 0x549   :  { %v405_v0 = vsub.f32 %v397_v34, %v404_v62 }
 0x54b   :  { %v434_v1 = vmul.f32 %v433_v63, %v405_v0 }
 0x54d   :  { %v435_v2 = vsel %vm349_vm0, %v434_v1, 0.0 }
 0x54e   :  { %436 = vadd.xlane.f32.xlu1 %v435_v2 }
 0x582   :  { %v485_v3 = vpop.permute.xlu1 %484 }
 0x583   :  { %v487_v4 = vsel %vm349_vm0, %v485_v3, 0.0 }
 0x584   :  { %488 = vadd.xlane.f32.xlu0 %v487_v4 }
 0x585   :  { %687 = shalt.err (!%p684_p9)
}
 0x586   :  { %512 = dma.vmem_to_hbm [thread:$0]  %s510_s18, 64, %s1076_s4, [#allocation5]   ;;  %vm438_vm8 = vcmask 1043456   ;;  %vm497_vm9 = vcmp.eq.s32.totalorder %v429_v57, 0  ;;  %vm499_vm10 = vcmp.eq.s32.totalorder %v429_v57, 1 }
 0x5d7   :  { %v437_v5 = vpop.xlane.xlu1 %436 }
 0x5d8   :  { %v439_v6 = vsel %vm438_vm8, %v437_v5, 0.0 }
 0x5d9   :  { %v440_v7 = vrot.slane %v439_v6, 4 }
 0x5db   :  { %v441_v8 = vadd.f32 %v440_v7, %v439_v6 }
 0x5dd   :  { %v442_v9 = vrot.slane %v441_v8, 2 }
 0x5df   :  { %v443_v12 = vadd.f32 %v442_v9, %v441_v8 }
 0x5e1   :  { %v444_v15 = vrot.slane %v443_v12, 1 }
 0x5e3   :  { %v445_v18 = vadd.f32 %v444_v15, %v443_v12 }
 0x5e5   :  { %v498_v21 = vsel %vm497_vm9, %v445_v18, 0.0 }
 0x60d   :  { %v489_v10 = vpop.xlane.xlu0 %488 }
 0x60e   :  { %v490_v11 = vsel %vm438_vm8, %v489_v10, 0.0 }
 0x60f   :  { %v491_v13 = vrot.slane %v490_v11, 4 }
 0x611   :  { %v492_v14 = vadd.f32 %v491_v13, %v490_v11 }
 0x613   :  { %v493_v16 = vrot.slane %v492_v14, 2 }
 0x615   :  { %v494_v17 = vadd.f32 %v493_v16, %v492_v14 }
 0x617   :  { %v495_v19 = vrot.slane %v494_v17, 1 }
 0x619   :  { %v496_v20 = vadd.f32 %v495_v19, %v494_v17 }
 0x61b   :  { %v500_v22 = vsel %vm499_vm10, %v496_v20, 0.0 }
 0x61c   :  { %v501_v23 = vadd.f32 %v500_v22, %v498_v21 }
 0x61e   :  { %502 = vst [vmem:[%s1077_s5] sm:$0xff] %v501_v23 }
 0x61f   :  { %698 = dma.done.wait [#allocation5], 64  }
 0x620   :  { %699 = vsyncadd [#allocation5], 4294967232 }
 0x621   :  { %520 = vsyncpa [#allocation5], 1 }

</bundles_post_ra>
